<compile_context>
chip_gen: v6e
topology: v6e:2x2x1
jax: 0.10.0
libtpu: 0.0.40
codegen_flags: <defaults>
</compile_context>

<pallas_src>
import functools
import math

import jax
import jax.numpy as jnp
from jax.experimental import pallas as pl
from jax.experimental.pallas import tpu as pltpu


def _round_up(x, m):
    return ((x + m - 1) // m) * m


def _pick_lane_tile(bt_pad, cap=1024):
    """bt_pad is a multiple of 128. Largest 128-multiple divisor of bt_pad that is <= cap.

    For bt_pad <= cap this is a single full-extent block (best on single-TC v5e/v6e and
    fine on v7x at small sizes); larger bt_pad yields >=2 parallel blocks (>=128 lanes
    each, typically 1024) so both v7x TensorCores are fed."""
    n128 = bt_pad // 128
    best = 1
    for d in range(1, n128 + 1):
        if n128 % d == 0 and d * 128 <= cap:
            best = d
    return best * 128


def _temporal_embedding_kernel(seq_ref, tbl_ref, out_ref, *,
                               points_per_hour, time_slots, k_pad):
    # seq_ref : (C, Pt)   channels on sublanes, flattened batch*time positions on lanes
    # tbl_ref : (F, Kp)   transposed fused table  [time_day ; time_week ; zero-pad]
    # out_ref : (F, Pt)   lane-dense output (Pt multiple of 128 -> unmasked stores)
    st = seq_ref[...]                                          # (C, Pt)
    c, ptc = st.shape

    hour = (st[c - 2:c - 1, :] + 0.5) * 23.0                   # (1, Pt)
    minute = (st[c - 1:c, :] + 0.5) * 59.0                     # (1, Pt)
    hour_index = ((hour * 60.0 + minute) /
                  (60.0 / points_per_hour)).astype(jnp.int32)  # trunc like .long()
    hour_index = jnp.clip(hour_index, 0, time_slots - 1)
    day_index = ((st[2:3, :] + 0.5) * 6.0).astype(jnp.int32)   # (1, Pt)
    day_index = jnp.clip(day_index, 0, 6) + time_slots         # offset into fused table

    # Transposed one-hot: fused-table row on sublanes, positions on lanes.
    # Two hot rows per column (hour row + week row) -> one matmul does both gathers
    # and their sum.
    k = jax.lax.broadcasted_iota(jnp.int32, (k_pad, ptc), 0)   # (Kp, Pt)
    oh = ((k == hour_index) | (k == day_index)).astype(tbl_ref.dtype)

    # Single fused gather-as-matmul on the MXU: (F, Kp) @ (Kp, Pt) -> (F, Pt)
    out_ref[...] = jnp.dot(tbl_ref[...], oh,
                           preferred_element_type=jnp.float32).astype(out_ref.dtype)


def temporal_embedding(seq_time, time_day, time_week, *, points_per_hour, num_nodes):
    """Matches TemporalEmbedding.forward: returns (B, F, num_nodes, T)."""
    b, c, t = seq_time.shape
    assert c >= 3, "need at least day/hour/minute channels"
    # NOTE: day is read at fixed channel 2, hour/minute at channels C-2 / C-1, exactly
    # like the PyTorch module; with C < 4 those channels alias (module semantics kept).
    time_slots, f = time_day.shape
    assert time_week.shape == (7, f)
    out_dtype = jnp.promote_types(time_day.dtype, time_week.dtype)

    # --- fused, transposed embedding table: (F, Kp), Kp = round_up(TIME + 7, 8) ---
    k_total = time_slots + 7
    k_pad = _round_up(k_total, 8)
    table = jnp.concatenate(
        [time_day.astype(out_dtype),
         time_week.astype(out_dtype),
         jnp.zeros((k_pad - k_total, f), out_dtype)], axis=0)          # (Kp, F)
    table_t = jnp.transpose(table)                                     # (F, Kp)

    # --- seq as (C, BT): channels on sublanes, positions on lanes, padded to 128 ---
    bt = b * t
    seq_flat = jnp.transpose(seq_time, (1, 0, 2)).reshape(c, bt)       # (C, BT)
    bt_pad = _round_up(bt, 128)
    pt = _pick_lane_tile(bt_pad)
    bt_pad = _round_up(bt_pad, pt)
    if bt_pad > bt:
        seq_flat = jnp.pad(seq_flat, ((0, 0), (0, bt_pad - bt)))       # zeros -> in-range idx

    grid = (bt_pad // pt,)
    kernel = functools.partial(_temporal_embedding_kernel,
                               points_per_hour=points_per_hour,
                               time_slots=time_slots,
                               k_pad=k_pad)

    emb_t = pl.pallas_call(
        kernel,
        out_shape=jax.ShapeDtypeStruct((f, bt_pad), out_dtype),
        grid_spec=pltpu.PrefetchScalarGridSpec(
            num_scalar_prefetch=0,
            grid=grid,
            in_specs=[
                pl.BlockSpec((c, pt), lambda i: (0, i)),        # seq, lane-tiled
                pl.BlockSpec((f, k_pad), lambda i: (0, 0)),     # fused table, resident
            ],
            out_specs=pl.BlockSpec((f, pt), lambda i: (0, i)),  # lane-dense output
        ),
        compiler_params=pltpu.CompilerParams(dimension_semantics=("parallel",)),
    )(seq_flat, table_t)

    # Node broadcast + (0, 3, 2, 1) permute stay in the XLA wrapper: the kernel only
    # writes F*B*T values instead of the N-fold redundant (B, F, N, T) tensor.
    emb = jnp.transpose(emb_t[:, :bt].reshape(f, b, t), (1, 0, 2))     # (B, F, T)
    out = jnp.broadcast_to(emb[:, :, None, :], (b, f, num_nodes, t))
    return out


def temporal_embedding_ref(seq_time, time_day, time_week, *, points_per_hour, num_nodes):
    # Pure-JAX reference mirroring the PyTorch forward exactly.
    B, C, T = seq_time.shape
    F = time_day.shape[1]
    hour = (seq_time[:, -2, :] + 0.5) * 23.0
    minute = (seq_time[:, -1, :] + 0.5) * 59.0
    hour_index = ((hour * 60.0 + minute) / (60.0 / points_per_hour)).astype(jnp.int32)  # (B,T)
    day_index = ((seq_time[:, 2, :] + 0.5) * 6.0).astype(jnp.int32)                     # (B,T)
    emb = time_day[hour_index] + time_week[day_index]                                   # (B,T,F)
    emb = jnp.broadcast_to(emb[:, :, None, :], (B, T, num_nodes, F))
    return jnp.transpose(emb, (0, 3, 2, 1))                                             # (B,F,N,T)


def xavier_uniform(key, shape, dtype=jnp.float32):
    fan_out, fan_in = shape
    bound = math.sqrt(6.0 / (fan_in + fan_out))
    return jax.random.uniform(key, shape, dtype=dtype, minval=-bound, maxval=bound)


if __name__ == "__main__":
    # Module hyperparameters (small but consistent with the forward's semantics).
    points_per_hour = 12
    time_slots = 24 * points_per_hour   # 288
    features = 32
    num_nodes = 16

    B, C, T = 2, 5, 8                   # C >= 4 channels: [..., day@2, ..., hour@-2, minute@-1]

    k0, k1, k2 = jax.random.split(jax.random.PRNGKey(0), 3)
    time_day = xavier_uniform(k0, (time_slots, features))
    time_week = xavier_uniform(k1, (7, features))
    # seq_time values normalized to [-0.5, 0.5) as the module expects.
    seq_time = jax.random.uniform(k2, (B, C, T), dtype=jnp.float32, minval=-0.5, maxval=0.5)

    out = temporal_embedding(seq_time, time_day, time_week,
                             points_per_hour=points_per_hour, num_nodes=num_nodes)
    out = jax.block_until_ready(out)

    ref = temporal_embedding_ref(seq_time, time_day, time_week,
                                 points_per_hour=points_per_hour, num_nodes=num_nodes)
    assert out.shape == (B, features, num_nodes, T), out.shape
    assert out.dtype == ref.dtype, (out.dtype, ref.dtype)
    assert jnp.allclose(out, ref, atol=1e-6), "mismatch vs reference"

    print("KERNEL_OK")
</pallas_src>

<mosaic_0001>
module attributes {stable_mosaic.version = 11 : i64} {
  func.func @_temporal_embedding_kernel(%arg0: i32, %arg1: memref<5x128xf32, #tpu.memory_space<vmem>>, %arg2: memref<32x296xf32, #tpu.memory_space<vmem>>, %arg3: memref<32x128xf32, #tpu.memory_space<vmem>>) attributes {dimension_semantics = [#tpu.dimension_semantics<parallel>], iteration_bounds = array<i64: 1>, scalar_prefetch = 0 : i64, scratch_operands = 0 : i64, tpu.core_type = #tpu.core_type<tc>, window_params = [{transform_indices = @transform_0, window_bounds = array<i64: 5, 128>}, {pipeline_mode = #tpu.pipeline_mode<synchronous>, transform_indices = @transform_1, window_bounds = array<i64: 32, 296>}, {transform_indices = @transform_2, window_bounds = array<i64: 32, 128>}]} {
    %c0 = arith.constant 0 : index
    %c0_0 = arith.constant 0 : index
    %0 = vector.load %arg1[%c0, %c0_0] : memref<5x128xf32, #tpu.memory_space<vmem>>, vector<5x128xf32>
    %1 = vector.extract_strided_slice %0 {offsets = [3, 0], sizes = [1, 128], strides = [1, 1]} : vector<5x128xf32> to vector<1x128xf32>
    %cst = arith.constant 5.000000e-01 : f32
    %2 = vector.broadcast %cst : f32 to vector<1x128xf32>
    %3 = arith.addf %1, %2 : vector<1x128xf32>
    %cst_1 = arith.constant 2.300000e+01 : f32
    %4 = vector.broadcast %cst_1 : f32 to vector<1x128xf32>
    %5 = arith.mulf %3, %4 : vector<1x128xf32>
    %6 = vector.extract_strided_slice %0 {offsets = [4, 0], sizes = [1, 128], strides = [1, 1]} : vector<5x128xf32> to vector<1x128xf32>
    %cst_2 = arith.constant 5.000000e-01 : f32
    %7 = vector.broadcast %cst_2 : f32 to vector<1x128xf32>
    %8 = arith.addf %6, %7 : vector<1x128xf32>
    %cst_3 = arith.constant 5.900000e+01 : f32
    %9 = vector.broadcast %cst_3 : f32 to vector<1x128xf32>
    %10 = arith.mulf %8, %9 : vector<1x128xf32>
    %cst_4 = arith.constant 6.000000e+01 : f32
    %11 = vector.broadcast %cst_4 : f32 to vector<1x128xf32>
    %12 = arith.mulf %5, %11 : vector<1x128xf32>
    %13 = arith.addf %12, %10 : vector<1x128xf32>
    %cst_5 = arith.constant 5.000000e+00 : f32
    %14 = vector.broadcast %cst_5 : f32 to vector<1x128xf32>
    %15 = arith.divf %13, %14 : vector<1x128xf32>
    %16 = arith.fptosi %15 : vector<1x128xf32> to vector<1x128xi32>
    %c0_i32 = arith.constant 0 : i32
    %c287_i32 = arith.constant 287 : i32
    %17 = vector.broadcast %c0_i32 : i32 to vector<1x128xi32>
    %18 = arith.maxsi %17, %16 : vector<1x128xi32>
    %19 = vector.broadcast %c287_i32 : i32 to vector<1x128xi32>
    %20 = arith.minsi %19, %18 : vector<1x128xi32>
    %21 = vector.extract_strided_slice %0 {offsets = [2, 0], sizes = [1, 128], strides = [1, 1]} : vector<5x128xf32> to vector<1x128xf32>
    %cst_6 = arith.constant 5.000000e-01 : f32
    %22 = vector.broadcast %cst_6 : f32 to vector<1x128xf32>
    %23 = arith.addf %21, %22 : vector<1x128xf32>
    %cst_7 = arith.constant 6.000000e+00 : f32
    %24 = vector.broadcast %cst_7 : f32 to vector<1x128xf32>
    %25 = arith.mulf %23, %24 : vector<1x128xf32>
    %26 = arith.fptosi %25 : vector<1x128xf32> to vector<1x128xi32>
    %c0_i32_8 = arith.constant 0 : i32
    %c6_i32 = arith.constant 6 : i32
    %27 = vector.broadcast %c0_i32_8 : i32 to vector<1x128xi32>
    %28 = arith.maxsi %27, %26 : vector<1x128xi32>
    %29 = vector.broadcast %c6_i32 : i32 to vector<1x128xi32>
    %30 = arith.minsi %29, %28 : vector<1x128xi32>
    %c288_i32 = arith.constant 288 : i32
    %31 = vector.broadcast %c288_i32 : i32 to vector<1x128xi32>
    %32 = arith.addi %30, %31 : vector<1x128xi32>
    %33 = tpu.iota {dimensions = array<i32: 0>} : vector<296x128xi32>
    %34 = vector.broadcast %20 : vector<1x128xi32> to vector<296x128xi32>
    %35 = arith.cmpi eq, %33, %34 : vector<296x128xi32>
    %36 = vector.broadcast %32 : vector<1x128xi32> to vector<296x128xi32>
    %37 = arith.cmpi eq, %33, %36 : vector<296x128xi32>
    %38 = arith.ori %35, %37 : vector<296x128xi1>
    %39 = arith.extui %38 : vector<296x128xi1> to vector<296x128xi32>
    %40 = arith.sitofp %39 : vector<296x128xi32> to vector<296x128xf32>
    %c0_9 = arith.constant 0 : index
    %c0_10 = arith.constant 0 : index
    %41 = vector.load %arg2[%c0_9, %c0_10] : memref<32x296xf32, #tpu.memory_space<vmem>>, vector<32x296xf32>
    %cst_11 = arith.constant dense<0.000000e+00> : vector<32x128xf32>
    %42 = tpu.matmul %41, %40, %cst_11 {dimension_numbers = #tpu.dot_dimension_numbers<[1], [0], [0], [1], [0, 0, 1, 1], [], []>} : vector<32x296xf32>, vector<296x128xf32>, vector<32x128xf32> -> vector<32x128xf32>
    %c0_12 = arith.constant 0 : index
    %c0_13 = arith.constant 0 : index
    %43 = vector.load %arg3[%c0_12, %c0_13] : memref<32x128xf32, #tpu.memory_space<vmem>>, vector<32x128xf32>
    tpu.vector_store %arg3[%c0_12, %c0_13], %42 {strides = array<i32>} : memref<32x128xf32, #tpu.memory_space<vmem>>, vector<32x128xf32>,
    return
  }
  func.func @transform_0(%arg0: i32) -> (i32, i32) {
    %c0_i32 = arith.constant 0 : i32
    %c0_i32_0 = arith.constant 0 : i32
    return %c0_i32, %arg0 : i32, i32
  }
  func.func @transform_1(%arg0: i32) -> (i32, i32) {
    %c0_i32 = arith.constant 0 : i32
    %c0_i32_0 = arith.constant 0 : i32
    %c0_i32_1 = arith.constant 0 : i32
    return %c0_i32, %c0_i32_0 : i32, i32
  }
  func.func @transform_2(%arg0: i32) -> (i32, i32) {
    %c0_i32 = arith.constant 0 : i32
    %c0_i32_0 = arith.constant 0 : i32
    return %c0_i32, %arg0 : i32, i32
  }
}

</mosaic_0001>

<bundles_post_ra>
// kernel: tpu_custom_call.1
= control target key start
LH: loop header
LB: loop body
LE: loop exit
PB: predicated region body
PF: predicated region fallthrough
CT: control target
= control target key end

     0   :  { %7 = vsyncpa [#allocation3], 0  ;;  %s938_s0 = inlined_call_operand.hbm [shape: f32[5,128], index: 0, kind: input, shape index: {}]   ;;  %s939_s1 = inlined_call_operand.hbm [shape: f32[32,296], index: 1, kind: input, shape index: {}]   ;;  %s940_s2 = inlined_call_operand.hbm [shape: f32[32,128], index: 2, kind: output, shape index: {}]  }
   0x1   :  { %8 = vsyncpa [#allocation6], 0 }
   0x2   :  { %9 = vsyncpa [#allocation4], 0  ;;  %s734_s9 = smov [#allocation2]   ;;  %s735_s11 = smov [#allocation5]  }
   0x3   :  { %s16_s10 = sshll.u32 %s734_s9, 4  ;;  %s25_s12 = sshll.u32 %s735_s11, 4  ;;  %s17_s10 = int_to_ptr.vmem [resolvable:$true] %s16_s10  ;;  %s26_s12 = int_to_ptr.vmem [resolvable:$true] %s25_s12 }
   0x4   :  { %s676_s13 = scalar_lea.vmem %s17_s10, 128  ;;  %p681_p1 = scmp.lt.s32.totalorder %s17_s10, %s17_s10 }
   0x5   :  { %p677_p0 = scmp.ne.s32.totalorder %s17_s10, %s676_s13  ;;  %p682_p2 = scmp.lt.s32.totalorder %s676_s13, %s676_s13 }
   0x7   :  { %p683_p3 = por %p682_p2, %p681_p1 }
   0x9   :  { %p684_p4 = pnand %p683_p3, %p677_p0 }
   0xb   :  { %687 = shalt.err (!%p684_p4)
}
   0xc   :  { %19 = dma.hbm_to_vmem [thread:$0]  %s938_s0, 128, %s17_s10, [#allocation3]  }
   0xd   :  { %s696_s16 = scalar_lea.vmem %s26_s12, 1536  ;;  %p701_p6 = scmp.lt.s32.totalorder %s26_s12, %s26_s12 }
   0xe   :  { %p697_p5 = scmp.ne.s32.totalorder %s26_s12, %s696_s16  ;;  %p702_p7 = scmp.lt.s32.totalorder %s696_s16, %s696_s16 }
  0x10   :  { %p703_p8 = por %p702_p7, %p701_p6 }
  0x12   :  { %p704_p9 = pnand %p703_p8, %p697_p5 }
  0x14   :  { %707 = shalt.err (!%p704_p9)
}
  0x15   :  { %s736_s17 = smov 384   ;;  %s737_s18 = smov 24  }
  0x16   :  { %31 = dma.hbm_to_vmem [thread:$0]  %s939_s1, 1536, %s26_s12, [#allocation6], %s736_s17, %s736_s17, %s737_s18  }
  0x17   :  { %728 = dma.done.wait [#allocation3], 128  }
  0x18   :  { %729 = vsyncadd [#allocation3], 4294967168 }
  0x19   :  { %730 = dma.done.wait [#allocation6], 1536  }
  0x1a   :  { %731 = vsyncadd [#allocation6], 4294965760  ;;  %v38_v0 = vld [vmem:[#allocation2] sm:$0x1f]  ;;  %vm304_vm0 = vcmask 326656   ;;  %v293_v2 = vld [vmem:[#allocation5 + $0x8] sm:$0xff]  ;;  %v61_v7 = vlaneseq }
  0x1b   :  { %v39_v1 = vadd.f32 0.5, %v38_v0  ;;  %381 = vmatprep.mubr.f32.mxu0 %v293_v2  ;;  %v294_v3 = vld [vmem:[#allocation5 + $0x10] sm:$0xff]  ;;  %v738_v34 = vmov 1.0   ;;  %v292_v63 = vld [vmem:[#allocation5] sm:$0xff]  ;;  %s739_s0 = smov [#allocation7]  }
  0x1c   :  { %650 = vmatprep.mubr.msk.f32.mxu1 %vm304_vm0, %v294_v3  ;;  %v764_v13 = vshrl.u32 %v61_v7, 7  ;;  %v296_v0 = vld [vmem:[#allocation5 + $0x20] sm:$0xff]  ;;  %v295_v3 = vld [vmem:[#allocation5 + $0x18] sm:$0xff]  ;;  %v302_v7 = vld [vmem:[#allocation5 + $0x50] sm:$0xff]  ;;  %s496_s1 = sshll.u32 %s739_s0, 4  ;;  %s497_s1 = int_to_ptr.vmem [resolvable:$true] %s496_s1 }
  0x1d   :  { %v40_v4 = vmul.f32 23.0, %v39_v1  ;;  %v41_v5 = vmul.f32 59.0, %v39_v1  ;;  %v54_v6 = vmul.f32 6.0, %v39_v1  ;;  %v297_v1 = vld [vmem:[#allocation5 + $0x28] sm:$0xff]  ;;  %v300_v2 = vld [vmem:[#allocation5 + $0x40] sm:$0xff]  ;;  %s708_s21 = scalar_lea.vmem %s497_s1, 512  ;;  %p713_p11 = scmp.lt.s32.totalorder %s497_s1, %s497_s1 }
  0x1e   :  { %v142_v17 = vsub.s32 2, %v764_v13  ;;  %v101_v21 = vsub.s32 3, %v764_v13  ;;  %v93_v23 = vadd.s32 248, %v764_v13  ;;  %v77_v25 = vadd.s32 120, %v764_v13  ;;  %p709_p10 = scmp.ne.s32.totalorder %s497_s1, %s708_s21  ;;  %p714_p12 = scmp.lt.s32.totalorder %s708_s21, %s708_s21 }
  0x1f   :  { %v42_v8 = vmul.f32 60.0, %v40_v4  ;;  %v44_v9 = vrot.slane %v41_v5, 1  ;;  %v658_v10 = vtrunc.f32 %v54_v6  ;;  %v92_v26 = vadd.s32 240, %v764_v13  ;;  %v299_v4 = vld [vmem:[#allocation5 + $0x38] sm:$0xff]  ;;  %v298_v6 = vld [vmem:[#allocation5 + $0x30] sm:$0xff] }
  0x20   :  { %v76_v28 = vadd.s32 112, %v764_v13  ;;  %v91_v30 = vadd.s32 232, %v764_v13  ;;  %v75_v31 = vadd.s32 104, %v764_v13  ;;  %v90_v32 = vadd.s32 224, %v764_v13  ;;  %v303_v5 = vld [vmem:[#allocation5 + $0x58] sm:$0xff]  ;;  %p715_p13 = por %p714_p12, %p713_p11 }
  0x21   :  { %v46_v11 = vadd.f32 %v44_v9, %v42_v8  ;;  %v659_v12 = vcvt.f32.s32 %v658_v10  ;;  %v74_v33 = vadd.s32 96, %v764_v13  ;;  %v89_v35 = vadd.s32 216, %v764_v13  ;;  %v301_v8 = vld [vmem:[#allocation5 + $0x48] sm:$0xff] }
  0x22   :  { %v73_v36 = vadd.s32 88, %v764_v13  ;;  %v88_v37 = vadd.s32 208, %v764_v13  ;;  %v72_v38 = vadd.s32 80, %v764_v13  ;;  %v87_v39 = vadd.s32 200, %v764_v13  ;;  %p716_p0 = pnand %p715_p13, %p709_p10 }
  0x23   :  { %v48_v14 = vmul.f32 0.2, %v46_v11  ;;  %vm56_vm1 = vcmp.gt.s32.totalorder %v659_v12, 0  ;;  %v71_v40 = vadd.s32 72, %v764_v13  ;;  %v86_v41 = vadd.s32 192, %v764_v13 }
  0x24   :  { %v57_v15 = vsel %vm56_vm1, %v659_v12, 0  ;;  %v70_v42 = vadd.s32 64, %v764_v13  ;;  %v85_v43 = vadd.s32 184, %v764_v13  ;;  %v69_v44 = vadd.s32 56, %v764_v13 }
  0x25   :  { %v656_v16 = vtrunc.f32 %v48_v14  ;;  %vm58_vm2 = vcmp.lt.s32.totalorder %v57_v15, 6  ;;  %v84_v45 = vadd.s32 176, %v764_v13  ;;  %v68_v46 = vadd.s32 48, %v764_v13 }
  0x26   :  { %v59_v18 = vsel %vm58_vm2, %v57_v15, 6  ;;  %v83_v47 = vadd.s32 168, %v764_v13  ;;  %v67_v48 = vadd.s32 40, %v764_v13  ;;  %v82_v49 = vadd.s32 160, %v764_v13 }
  0x27   :  { %v657_v19 = vcvt.f32.s32 %v656_v16  ;;  %v60_v20 = vadd.s32 288, %v59_v18  ;;  %v66_v50 = vadd.s32 32, %v764_v13  ;;  %v81_v51 = vadd.s32 152, %v764_v13 }
  0x28   :  { %v98_v52 = vadd.s32 288, %v764_v13  ;;  %v65_v53 = vadd.s32 24, %v764_v13  ;;  %v80_v54 = vadd.s32 144, %v764_v13  ;;  %v97_v55 = vadd.s32 280, %v764_v13 }
  0x29   :  { %vm50_vm3 = vcmp.gt.s32.totalorder %v657_v19, 0  ;;  %v768_v22 = vrot.slane %v60_v20, %v142_v17  ;;  %v64_v56 = vadd.s32 16, %v764_v13  ;;  %v79_v57 = vadd.s32 136, %v764_v13 }
  0x2a   :  { %v51_v24 = vsel %vm50_vm3, %v657_v19, 0  ;;  %v96_v58 = vadd.s32 272, %v764_v13  ;;  %v63_v59 = vadd.s32 8, %v764_v13  ;;  %v78_v60 = vadd.s32 128, %v764_v13 }
  0x2b   :  { %vm52_vm4 = vcmp.lt.s32.totalorder %v51_v24, 287  ;;  %vm175_vm5 = vcmp.eq.s32.totalorder %v93_v23, %v768_v22  ;;  %vm159_vm6 = vcmp.eq.s32.totalorder %v77_v25, %v768_v22  ;;  %vm174_vm10 = vcmp.eq.s32.totalorder %v92_v26, %v768_v22 }
  0x2c   :  { %v53_v27 = vsel %vm52_vm4, %v51_v24, 287  ;;  %vm158_vm13 = vcmp.eq.s32.totalorder %v76_v28, %v768_v22  ;;  %vm173_vm1 = vcmp.eq.s32.totalorder %v91_v30, %v768_v22  ;;  %vm157_vm4 = vcmp.eq.s32.totalorder %v75_v31, %v768_v22 }
  0x2d   :  { %v774_v29 = vrot.slane %v53_v27, %v101_v21  ;;  %v95_v61 = vadd.s32 264, %v764_v13  ;;  %v94_v62 = vadd.s32 256, %v764_v13 }
  0x2f   :  { %vm134_vm7 = vcmp.eq.s32.totalorder %v93_v23, %v774_v29  ;;  %vm118_vm8 = vcmp.eq.s32.totalorder %v77_v25, %v774_v29  ;;  %vm133_vm9 = vcmp.eq.s32.totalorder %v92_v26, %v774_v29  ;;  %vm117_vm12 = vcmp.eq.s32.totalorder %v76_v28, %v774_v29 }
  0x30   :  { %vm212_vm11 = vmor %vm134_vm7, %vm175_vm5  ;;  %vm132_vm15 = vcmp.eq.s32.totalorder %v91_v30, %v774_v29  ;;  %vm116_vm3 = vcmp.eq.s32.totalorder %v75_v31, %v774_v29  ;;  %vm172_vm7 = vcmp.eq.s32.totalorder %v90_v32, %v768_v22 }
  0x31   :  { %587 = vmatprep.subr.msk.mxu0 %vm212_vm11, %v738_v34  ;;  %vm196_vm14 = vmor %vm118_vm8, %vm159_vm6  ;;  %vm131_vm6 = vcmp.eq.s32.totalorder %v90_v32, %v774_v29 }
  0x32   :  { %588 = vmatpush3.msk.msra.mxu0 %vm196_vm14, %v738_v34  ;;  %vm211_vm2 = vmor %vm133_vm9, %vm174_vm10  ;;  %vm115_vm9 = vcmp.eq.s32.totalorder %v74_v33, %v774_v29  ;;  %vm156_vm10 = vcmp.eq.s32.totalorder %v74_v33, %v768_v22 }
  0x33   :  { %589 = vmatprep.subr.msk.mxu0 %vm211_vm2, %v738_v34  ;;  %vm195_vm5 = vmor %vm117_vm12, %vm158_vm13  ;;  %vm130_vm12 = vcmp.eq.s32.totalorder %v89_v35, %v774_v29  ;;  %vm171_vm13 = vcmp.eq.s32.totalorder %v89_v35, %v768_v22 }
  0x34   :  { %590 = vmatpush3.msk.msra.mxu0 %vm195_vm5, %v738_v34  ;;  %vm210_vm8 = vmor %vm132_vm15, %vm173_vm1  ;;  %vm114_vm15 = vcmp.eq.s32.totalorder %v73_v36, %v774_v29  ;;  %vm155_vm1 = vcmp.eq.s32.totalorder %v73_v36, %v768_v22 }
  0x35   :  { %591 = vmatprep.subr.msk.mxu0 %vm210_vm8, %v738_v34  ;;  %vm194_vm11 = vmor %vm116_vm3, %vm157_vm4  ;;  %vm129_vm3 = vcmp.eq.s32.totalorder %v88_v37, %v774_v29  ;;  %vm170_vm4 = vcmp.eq.s32.totalorder %v88_v37, %v768_v22 }
  0x36   :  { %592 = vmatpush3.msk.msra.mxu0 %vm194_vm11, %v738_v34  ;;  %vm209_vm14 = vmor %vm131_vm6, %vm172_vm7  ;;  %vm113_vm6 = vcmp.eq.s32.totalorder %v72_v38, %v774_v29  ;;  %vm154_vm7 = vcmp.eq.s32.totalorder %v72_v38, %v768_v22 }
  0x37   :  { %593 = vmatprep.subr.msk.mxu0 %vm209_vm14, %v738_v34  ;;  %vm193_vm2 = vmor %vm115_vm9, %vm156_vm10  ;;  %vm128_vm9 = vcmp.eq.s32.totalorder %v87_v39, %v774_v29  ;;  %vm169_vm10 = vcmp.eq.s32.totalorder %v87_v39, %v768_v22 }
  0x38   :  { %594 = vmatpush3.msk.msra.mxu0 %vm193_vm2, %v738_v34  ;;  %vm208_vm5 = vmor %vm130_vm12, %vm171_vm13  ;;  %vm112_vm12 = vcmp.eq.s32.totalorder %v71_v40, %v774_v29  ;;  %vm153_vm13 = vcmp.eq.s32.totalorder %v71_v40, %v768_v22 }
  0x39   :  { %595 = vmatprep.subr.msk.mxu0 %vm208_vm5, %v738_v34  ;;  %vm192_vm8 = vmor %vm114_vm15, %vm155_vm1  ;;  %vm127_vm15 = vcmp.eq.s32.totalorder %v86_v41, %v774_v29  ;;  %vm168_vm1 = vcmp.eq.s32.totalorder %v86_v41, %v768_v22 }
  0x3a   :  { %596 = vmatpush3.msk.msra.mxu0 %vm192_vm8, %v738_v34  ;;  %vm207_vm11 = vmor %vm129_vm3, %vm170_vm4  ;;  %vm111_vm3 = vcmp.eq.s32.totalorder %v70_v42, %v774_v29  ;;  %vm152_vm4 = vcmp.eq.s32.totalorder %v70_v42, %v768_v22 }
  0x3b   :  { %597 = vmatprep.subr.msk.mxu0 %vm207_vm11, %v738_v34  ;;  %vm191_vm14 = vmor %vm113_vm6, %vm154_vm7  ;;  %vm126_vm6 = vcmp.eq.s32.totalorder %v85_v43, %v774_v29  ;;  %vm167_vm7 = vcmp.eq.s32.totalorder %v85_v43, %v768_v22 }
  0x3c   :  { %598 = vmatpush3.msk.msra.mxu0 %vm191_vm14, %v738_v34  ;;  %vm206_vm2 = vmor %vm128_vm9, %vm169_vm10  ;;  %vm110_vm9 = vcmp.eq.s32.totalorder %v69_v44, %v774_v29  ;;  %vm151_vm10 = vcmp.eq.s32.totalorder %v69_v44, %v768_v22 }
  0x3d   :  { %599 = vmatprep.subr.msk.mxu0 %vm206_vm2, %v738_v34  ;;  %vm190_vm5 = vmor %vm112_vm12, %vm153_vm13  ;;  %vm125_vm12 = vcmp.eq.s32.totalorder %v84_v45, %v774_v29  ;;  %vm166_vm13 = vcmp.eq.s32.totalorder %v84_v45, %v768_v22 }
  0x3e   :  { %600 = vmatpush3.msk.msra.mxu0 %vm190_vm5, %v738_v34  ;;  %vm205_vm8 = vmor %vm127_vm15, %vm168_vm1  ;;  %vm109_vm15 = vcmp.eq.s32.totalorder %v68_v46, %v774_v29  ;;  %vm150_vm1 = vcmp.eq.s32.totalorder %v68_v46, %v768_v22 }
  0x3f   :  { %601 = vmatprep.subr.msk.mxu0 %vm205_vm8, %v738_v34  ;;  %vm189_vm11 = vmor %vm111_vm3, %vm152_vm4  ;;  %vm124_vm3 = vcmp.eq.s32.totalorder %v83_v47, %v774_v29  ;;  %vm165_vm4 = vcmp.eq.s32.totalorder %v83_v47, %v768_v22 }
  0x40   :  { %602 = vmatpush3.msk.msra.mxu0 %vm189_vm11, %v738_v34  ;;  %vm204_vm14 = vmor %vm126_vm6, %vm167_vm7  ;;  %vm108_vm6 = vcmp.eq.s32.totalorder %v67_v48, %v774_v29  ;;  %vm149_vm7 = vcmp.eq.s32.totalorder %v67_v48, %v768_v22 }
  0x41   :  { %603 = vmatprep.subr.msk.mxu0 %vm204_vm14, %v738_v34  ;;  %vm188_vm2 = vmor %vm110_vm9, %vm151_vm10  ;;  %vm123_vm9 = vcmp.eq.s32.totalorder %v82_v49, %v774_v29  ;;  %vm164_vm10 = vcmp.eq.s32.totalorder %v82_v49, %v768_v22 }
  0x42   :  { %604 = vmatpush3.msk.msra.mxu0 %vm188_vm2, %v738_v34  ;;  %vm203_vm5 = vmor %vm125_vm12, %vm166_vm13  ;;  %vm107_vm12 = vcmp.eq.s32.totalorder %v66_v50, %v774_v29  ;;  %vm148_vm13 = vcmp.eq.s32.totalorder %v66_v50, %v768_v22 }
  0x43   :  { %605 = vmatprep.subr.msk.mxu0 %vm203_vm5, %v738_v34  ;;  %vm187_vm8 = vmor %vm109_vm15, %vm150_vm1  ;;  %vm122_vm15 = vcmp.eq.s32.totalorder %v81_v51, %v774_v29  ;;  %vm163_vm1 = vcmp.eq.s32.totalorder %v81_v51, %v768_v22 }
  0x44   :  { %606 = vmatpush3.msk.msra.mxu0 %vm187_vm8, %v738_v34  ;;  %vm202_vm11 = vmor %vm124_vm3, %vm165_vm4  ;;  %vm139_vm3 = vcmp.eq.s32.totalorder %v98_v52, %v774_v29  ;;  %vm180_vm4 = vcmp.eq.s32.totalorder %v98_v52, %v768_v22 }
  0x45   :  { %607 = vmatprep.subr.msk.mxu0 %vm202_vm11, %v738_v34  ;;  %vm186_vm14 = vmor %vm108_vm6, %vm149_vm7  ;;  %vm106_vm6 = vcmp.eq.s32.totalorder %v65_v53, %v774_v29  ;;  %vm147_vm7 = vcmp.eq.s32.totalorder %v65_v53, %v768_v22 }
  0x46   :  { %608 = vmatpush3.msk.msra.mxu0 %vm186_vm14, %v738_v34  ;;  %vm201_vm2 = vmor %vm123_vm9, %vm164_vm10  ;;  %vm121_vm9 = vcmp.eq.s32.totalorder %v80_v54, %v774_v29  ;;  %vm162_vm10 = vcmp.eq.s32.totalorder %v80_v54, %v768_v22 }
  0x47   :  { %609 = vmatprep.subr.msk.mxu0 %vm201_vm2, %v738_v34  ;;  %vm185_vm5 = vmor %vm107_vm12, %vm148_vm13  ;;  %vm138_vm12 = vcmp.eq.s32.totalorder %v97_v55, %v774_v29  ;;  %vm179_vm13 = vcmp.eq.s32.totalorder %v97_v55, %v768_v22 }
  0x48   :  { %610 = vmatpush3.msk.msra.mxu0 %vm185_vm5, %v738_v34  ;;  %vm200_vm8 = vmor %vm122_vm15, %vm163_vm1  ;;  %vm105_vm15 = vcmp.eq.s32.totalorder %v64_v56, %v774_v29  ;;  %vm146_vm1 = vcmp.eq.s32.totalorder %v64_v56, %v768_v22 }
  0x49   :  { %611 = vmatprep.subr.msk.mxu0 %vm200_vm8, %v738_v34  ;;  %vm217_vm11 = vmor %vm139_vm3, %vm180_vm4  ;;  %vm120_vm3 = vcmp.eq.s32.totalorder %v79_v57, %v774_v29  ;;  %vm161_vm4 = vcmp.eq.s32.totalorder %v79_v57, %v768_v22 }
  0x4a   :  { %640 = vmatprep.subr.msk.mxu1 %vm217_vm11, %v738_v34  ;;  %vm184_vm14 = vmor %vm106_vm6, %vm147_vm7  ;;  %vm137_vm6 = vcmp.eq.s32.totalorder %v96_v58, %v774_v29  ;;  %vm178_vm7 = vcmp.eq.s32.totalorder %v96_v58, %v768_v22 }
  0x4b   :  { %612 = vmatpush3.msk.msra.mxu0 %vm184_vm14, %v738_v34  ;;  %641 = vmatpush3.msk.msra.mxu1 %vm217_vm11, %v738_v34  ;;  %vm199_vm2 = vmor %vm121_vm9, %vm162_vm10  ;;  %vm104_vm9 = vcmp.eq.s32.totalorder %v63_v59, %v774_v29  ;;  %vm145_vm10 = vcmp.eq.s32.totalorder %v63_v59, %v768_v22 }
  0x4c   :  { %613 = vmatprep.subr.msk.mxu0 %vm199_vm2, %v738_v34  ;;  %vm216_vm5 = vmor %vm138_vm12, %vm179_vm13  ;;  %vm119_vm12 = vcmp.eq.s32.totalorder %v78_v60, %v774_v29  ;;  %vm160_vm13 = vcmp.eq.s32.totalorder %v78_v60, %v768_v22 }
  0x4d   :  { %642 = vmatprep.subr.msk.mxu1 %vm216_vm5, %v738_v34  ;;  %vm183_vm8 = vmor %vm105_vm15, %vm146_vm1  ;;  %vm136_vm15 = vcmp.eq.s32.totalorder %v95_v61, %v774_v29  ;;  %vm177_vm1 = vcmp.eq.s32.totalorder %v95_v61, %v768_v22 }
  0x4e   :  { %614 = vmatpush3.msk.msra.mxu0 %vm183_vm8, %v738_v34  ;;  %643 = vmatpush3.msk.msra.mxu1 %vm216_vm5, %v738_v34  ;;  %vm198_vm11 = vmor %vm120_vm3, %vm161_vm4  ;;  %vm103_vm8 = vcmp.eq.s32.totalorder %v764_v13, %v774_v29  ;;  %vm144_vm3 = vcmp.eq.s32.totalorder %v764_v13, %v768_v22  ;;  %vm135_vm5 = vcmp.eq.s32.totalorder %v94_v62, %v774_v29 }
  0x4f   :  { %615 = vmatprep.subr.msk.mxu0 %vm198_vm11, %v738_v34  ;;  %vm215_vm14 = vmor %vm137_vm6, %vm178_vm7  ;;  %vm176_vm6 = vcmp.eq.s32.totalorder %v94_v62, %v768_v22 }
  0x50   :  { %644 = vmatprep.subr.msk.mxu1 %vm215_vm14, %v738_v34  ;;  %vm182_vm2 = vmor %vm104_vm9, %vm145_vm10 }
  0x51   :  { %616 = vmatpush3.msk.msra.mxu0 %vm182_vm2, %v738_v34  ;;  %645 = vmatpush3.msk.msra.mxu1 %vm215_vm14, %v738_v34  ;;  %vm197_vm4 = vmor %vm119_vm12, %vm160_vm13 }
  0x52   :  { %617 = vmatprep.subr.msk.mxu0 %vm197_vm4, %v738_v34  ;;  %vm214_vm7 = vmor %vm136_vm15, %vm177_vm1 }
  0x53   :  { %646 = vmatprep.subr.msk.mxu1 %vm214_vm7, %v738_v34  ;;  %vm181_vm9 = vmor %vm103_vm8, %vm144_vm3 }
  0x54   :  { %618 = vmatpush3.msk.msra.mxu0 %vm181_vm9, %v738_v34  ;;  %647 = vmatpush3.msk.msra.mxu1 %vm214_vm7, %v738_v34  ;;  %vm213_vm10 = vmor %vm135_vm5, %vm176_vm6 }
  0x55   :  { %382 = vmatmul.mubr.f32.vlgmr.msra.gmra.mxu0 %v292_v63  ;;  %648 = vmatprep.subr.msk.mxu1 %vm213_vm10, %v738_v34 }
  0x56   :  { %649 = vmatpush3.msk.msra.mxu1 %vm213_vm10, %v738_v34  ;;  %386 = vmatprep.mubr.f32.mxu0 %v296_v0 }
  0x57   :  { %651 = vmatmul.mubr.msk.f32.vlgmr.msra.gmra.mxu1 %vm304_vm0, %v297_v1 }
  0x58   :  { %653 = vmatprep.mubr.msk.f32.mxu1 %vm304_vm0, %v300_v2 }
  0x59   :  { %387 = vmatmul.mubr.f32.gmra.mxu0 %v295_v3 }
  0x5a   :  { %391 = vmatprep.mubr.f32.mxu0 %v299_v4 }
  0x5b   :  { %654 = vmatmul.mubr.msk.f32.gmra.mxu1 %vm304_vm0, %v303_v5 }
  0x5d   :  { %392 = vmatmul.mubr.f32.gmra.mxu0 %v298_v6 }
  0x5e   :  { %396 = vmatprep.mubr.f32.mxu0 %v302_v7 }
  0x61   :  { %397 = vmatmul.mubr.f32.gmra.mxu0 %v301_v8 }
 0x115   :  { %v619_v9 = vpop.f32.mrf.mxu0 }
 0x117   :  { %v620_v10 = vpop.f32.mrf.mxu0  ;;  %v652_v11 = vpop.f32.mrf.mxu1 }
 0x118   :  { %v621_v12 = vadd.f32 %v620_v10, %v619_v9 }
 0x119   :  { %v622_v13 = vpop.f32.mrf.mxu0  ;;  %v468_v14 = vpop.f32.mrf.mxu1 }
 0x11a   :  { %v469_v15 = vadd.f32 %v621_v12, %v468_v14 }
 0x11b   :  { %v623_v16 = vpop.f32.mrf.mxu0  ;;  %v655_v17 = vpop.f32.mrf.mxu1 }
 0x11c   :  { %487 = vst [vmem:[#allocation7] sm:$0xff] %v469_v15  ;;  %v624_v18 = vadd.f32 %v623_v16, %v622_v13 }
 0x11d   :  { %v625_v19 = vpop.f32.mrf.mxu0  ;;  %v478_v22 = vpop.f32.mrf.mxu1 }
 0x11e   :  { %v474_v20 = vadd.f32 %v652_v11, %v624_v18 }
 0x11f   :  { %v626_v21 = vpop.f32.mrf.mxu0 }
 0x120   :  { %488 = vst [vmem:[#allocation7 + $0x8] sm:$0xff] %v474_v20  ;;  %v627_v23 = vadd.f32 %v626_v21, %v625_v19 }
 0x121   :  { %v628_v24 = vpop.f32.mrf.mxu0 }
 0x122   :  { %v479_v25 = vadd.f32 %v627_v23, %v478_v22 }
 0x123   :  { %v629_v26 = vpop.f32.mrf.mxu0 }
 0x124   :  { %489 = vst [vmem:[#allocation7 + $0x10] sm:$0xff] %v479_v25  ;;  %v630_v27 = vadd.f32 %v629_v26, %v628_v24 }
 0x126   :  { %v484_v28 = vadd.f32 %v655_v17, %v630_v27 }
 0x128   :  { %490 = vst [vmem:[#allocation7 + $0x18] sm:$0xff] %v484_v28 }
 0x129   :  { %719 = shalt.err (!%p716_p0)
}
 0x12a   :  { %s740_s22 = smov 128   ;;  %s741_s23 = smov 8  }
 0x12b   :  { %502 = dma.vmem_to_hbm [thread:$0]  %s497_s1, 512, %s940_s2, [#allocation4], %s740_s22, %s740_s22, %s741_s23  }
 0x12c   :  { %732 = dma.done.wait [#allocation4], 512  }
 0x12d   :  { %733 = vsyncadd [#allocation4], 4294966784 }
 0x12e   :  { %506 = vsyncpa [#allocation3], 1 }
 0x12f   :  { %507 = vsyncpa [#allocation6], 1 }
 0x130   :  { %508 = vsyncpa [#allocation4], 1 }

</bundles_post_ra>
